<compile_context>
chip_gen: v7x
topology: tpu7x:2x2x1
jax: 0.10.0
libtpu: 0.0.40
codegen_flags: <defaults>
</compile_context>

<pallas_src>
import functools

import numpy as np
import jax
import jax.numpy as jnp
from jax.experimental import pallas as pl
from jax.experimental.pallas import tpu as pltpu

_INV_LN2 = 1.4426950408889634  # 1 / ln(2): natural log -> log2


def _round_up(x, m):
    return -(-x // m) * m


def _cb_loss_kernel(logits_ref, labels_ref, classw_ref, out_ref, *,
                    loss_type, gamma, n_rows, tile_n, class_axis):
    batch_axis = 1 - class_axis

    z = logits_ref[...].astype(jnp.float32)        # (tile_n, C) or (C, tile_n)
    labels = labels_ref[...]                       # (tile_n, 1) or (1, tile_n) int32
    cw = classw_ref[...].astype(jnp.float32)       # (1, C)      or (C, 1)

    # One-hot of the target class along the class axis; reused for both the
    # target-logit gather and the class-balanced weight gather (no per-sample
    # weight stream from HBM, no XLA gather pass in the wrapper).
    cls = jax.lax.broadcasted_iota(jnp.int32, z.shape, class_axis)
    onehot = (cls == labels).astype(jnp.float32)

    z_t = jnp.sum(z * onehot, axis=class_axis, keepdims=True)     # target logit
    w = jnp.sum(cw * onehot, axis=class_axis, keepdims=True)      # CB weight

    # log-softmax of the target class via log-sum-exp (no divide, no log(P_t)).
    m = jnp.max(z, axis=class_axis, keepdims=True)
    lse = jnp.log(jnp.sum(jnp.exp(z - m), axis=class_axis, keepdims=True))
    logp_t = (z_t - m) - lse                                       # ln P_t  (<= 0)

    loss = -w * (logp_t * _INV_LN2)                                # -w * log2(P_t)
    if loss_type == "focal":
        pt = jnp.exp(logp_t)
        g = float(gamma)
        if g == 1.0:
            loss = loss * (1.0 - pt)
        elif g.is_integer():
            loss = loss * ((1.0 - pt) ** int(g))
        else:
            loss = loss * jnp.power(1.0 - pt, jnp.float32(g))

    # Mask the batch tail with where (NOT by multiplying by a zero weight): the
    # last block reads undefined HBM past row n_rows and NaN * 0 == NaN.
    row = (pl.program_id(0) * tile_n
           + jax.lax.broadcasted_iota(jnp.int32, loss.shape, batch_axis))
    loss = jnp.where(row < n_rows, loss, 0.0)

    # Per-tile partial sum, stored in lane 0 of this tile's (1, 128) output
    # block (all other lanes 0) -> tiny lane-dense writeback instead of (1, N).
    partial = jnp.sum(loss, axis=batch_axis, keepdims=True)        # (1, 1)
    pvec = jnp.broadcast_to(partial, out_ref.shape)                # (1, 128)
    lane = jax.lax.broadcasted_iota(jnp.int32, out_ref.shape, 1)
    out_ref[...] = jnp.where(lane == 0, pvec, 0.0)


def class_balanced_loss(probs, labels, class_freq, *, beta=0.999, gamma=1,
                        loss_type="softmax", target_block_bytes=1 << 20):
    """probs: (N, C) logits, labels: (N,) int, class_freq: (C,) counts -> scalar f32 mean loss."""
    N, C = probs.shape
    labels = labels.astype(jnp.int32)

    # Class-balanced weight table: tiny O(C) op in XLA.  (freq == 0 -> +inf
    # weight, mirroring the PyTorch reference.)
    freq = class_freq.astype(jnp.float32)
    class_w = (1.0 - beta) / (1.0 - jnp.power(jnp.float32(beta), freq))      # (C,)

    if C >= 128:
        # Classes already fill the 128-lane axis: consume (N, C) in place.
        class_axis = 1
        gran = 8                        # sublane granularity of the batch tile
        c_pad = _round_up(C, 128)       # lane padding of a logits block in VMEM
        lbl_pad = 128                   # (tile_n, 1) int32 labels pad to 128 lanes
        logits_in = probs               # no transpose, no pad
        labels_in = labels.reshape(N, 1)
        classw_in = class_w.reshape(1, C)
    else:
        # C < 128: keep the batch on the 128-lane axis so per-row VPU/EUP/XLU
        # work stays lane-dense; needs class-major logits.
        # TODO(synk): upstream producer should emit class-major (C, N) logits so
        # this one-time transpose (an extra HBM pass) disappears.
        class_axis = 0
        gran = 128                      # lane granularity of the batch tile
        c_pad = _round_up(C, 8)
        lbl_pad = 8
        logits_in = probs.T             # (C, N); NOT padded — tail masked in kernel
        labels_in = labels.reshape(1, N)
        classw_in = class_w.reshape(C, 1)

    # --- batch-tile sizing: by bytes, not a fixed cap ---
    elem_vmem_bytes = 4 * (c_pad + lbl_pad)                 # VMEM bytes / batch element
    tile_hbm = max(gran, target_block_bytes // (4 * C))     # ~1 MiB useful logits / step
    tile_vmem = max(gran, (20 << 20) // (2 * elem_vmem_bytes))  # 2 buffers <= ~20 MiB
    half_n = _round_up(N, 2 * gran) // 2                    # >= 2 balanced tiles (v7x)
    tile_n = max(gran, (min(tile_hbm, tile_vmem, half_n) // gran) * gran)
    n_tiles = pl.cdiv(N, tile_n)
    # TODO(synk): for C in the tens of thousands on v7x, add a C grid axis with an
    # online log-sum-exp instead of shrinking tile_n.

    if class_axis == 1:
        logits_spec = pl.BlockSpec((tile_n, C), lambda i: (i, 0))
        labels_spec = pl.BlockSpec((tile_n, 1), lambda i: (i, 0))
        classw_spec = pl.BlockSpec((1, C), lambda i: (0, 0))
    else:
        logits_spec = pl.BlockSpec((C, tile_n), lambda i: (0, i))
        labels_spec = pl.BlockSpec((1, tile_n), lambda i: (0, i))
        classw_spec = pl.BlockSpec((C, 1), lambda i: (0, 0))
    out_spec = pl.BlockSpec((1, 128), lambda i: (0, i))

    # Explicit VMEM budget: double-buffered blocks + headroom, capped at 48 MiB
    # (never v7x's full 64 MiB physical VMEM), floor 16 MiB (v5e default limit).
    classw_block_bytes = 4 * (c_pad * 128 if class_axis == 0 else 8 * c_pad)
    blocks_bytes = (2 * tile_n * elem_vmem_bytes
                    + 2 * classw_block_bytes
                    + 2 * 8 * 128 * 4)
    vmem_limit = int(min(48 << 20, max(16 << 20, 2 * blocks_bytes)))

    kernel = functools.partial(_cb_loss_kernel, loss_type=loss_type, gamma=gamma,
                               n_rows=N, tile_n=tile_n, class_axis=class_axis)
    partials = pl.pallas_call(
        kernel,
        out_shape=jax.ShapeDtypeStruct((1, n_tiles * 128), jnp.float32),
        grid=(n_tiles,),
        in_specs=[logits_spec, labels_spec, classw_spec],
        out_specs=out_spec,
        compiler_params=pltpu.CompilerParams(
            dimension_semantics=("parallel",),
            vmem_limit_bytes=vmem_limit,
        ),
    )(logits_in, labels_in, classw_in)

    # partials holds one per-tile sum in lane 0 of each (1, 128) block, zeros
    # elsewhere; divide by the true batch size for the mean.
    return jnp.sum(partials) / jnp.float32(N)


def reference_cb_loss(probs, labels, class_freq, *, beta=0.999, gamma=1,
                      loss_type="softmax"):
    """Pure-JAX reference mirroring the PyTorch ClassBalancedLoss forward."""
    freq = class_freq.astype(jnp.float32)
    class_w = (1.0 - beta) / (1.0 - jnp.power(jnp.float32(beta), freq))
    w = class_w[labels]
    p = jax.nn.softmax(probs.astype(jnp.float32), axis=1)
    pt = p[jnp.arange(probs.shape[0]), labels]
    if loss_type == "focal":
        loss = -w * (1.0 - pt) ** gamma * (jnp.log(pt) / jnp.log(2.0))
    else:
        loss = -w * (jnp.log(pt) / jnp.log(2.0))
    return jnp.mean(loss)


if __name__ == "__main__":
    key = jax.random.PRNGKey(0)
    k1, k2, k3, k4 = jax.random.split(key, 4)

    # --- small-C case (typical for the module): N=256, C=4 ---
    N, C = 256, 4
    class_freq = jnp.asarray(np.array([10.0, 20.0, 30.0, 40.0], dtype=np.float32))
    probs = jax.random.normal(k1, (N, C), dtype=jnp.float32)
    labels = jax.random.randint(k2, (N,), 0, C, dtype=jnp.int32)

    out = class_balanced_loss(probs, labels, class_freq)
    out = jax.block_until_ready(out)
    ref = reference_cb_loss(probs, labels, class_freq)
    assert np.allclose(np.asarray(out), np.asarray(ref), rtol=1e-4, atol=1e-5), (out, ref)

    out_f = class_balanced_loss(probs, labels, class_freq, loss_type="focal", gamma=2)
    out_f = jax.block_until_ready(out_f)
    ref_f = reference_cb_loss(probs, labels, class_freq, loss_type="focal", gamma=2)
    assert np.allclose(np.asarray(out_f), np.asarray(ref_f), rtol=1e-4, atol=1e-5), (out_f, ref_f)

    # --- lane-dense-classes case (C >= 128): logits consumed in place, no transpose ---
    N2, C2 = 160, 128
    freq2 = jnp.asarray(np.linspace(5.0, 500.0, C2).astype(np.float32))
    probs2 = jax.random.normal(k3, (N2, C2), dtype=jnp.float32)
    labels2 = jax.random.randint(k4, (N2,), 0, C2, dtype=jnp.int32)

    out2 = class_balanced_loss(probs2, labels2, freq2)
    out2 = jax.block_until_ready(out2)
    ref2 = reference_cb_loss(probs2, labels2, freq2)
    assert np.allclose(np.asarray(out2), np.asarray(ref2), rtol=1e-4, atol=1e-5), (out2, ref2)

    print("KERNEL_OK")
</pallas_src>

<mosaic_0001>
module attributes {stable_mosaic.version = 11 : i64} {
  func.func @_cb_loss_kernel(%arg0: i32, %arg1: memref<4x128xf32, #tpu.memory_space<vmem>>, %arg2: memref<1x128xi32, #tpu.memory_space<vmem>>, %arg3: memref<4x1xf32, #tpu.memory_space<vmem>>, %arg4: memref<1x128xf32, #tpu.memory_space<vmem>>) attributes {dimension_semantics = [#tpu.dimension_semantics<parallel>], iteration_bounds = array<i64: 2>, scalar_prefetch = 0 : i64, scratch_operands = 0 : i64, tpu.core_type = #tpu.core_type<tc>, window_params = [{transform_indices = @transform_0, window_bounds = array<i64: 4, 128>}, {transform_indices = @transform_1, window_bounds = array<i64: 1, 128>}, {pipeline_mode = #tpu.pipeline_mode<synchronous>, transform_indices = @transform_2, window_bounds = array<i64: 4, 1>}, {transform_indices = @transform_3, window_bounds = array<i64: 1, 128>}]} {
    %c0 = arith.constant 0 : index
    %c0_0 = arith.constant 0 : index
    %0 = vector.load %arg1[%c0, %c0_0] : memref<4x128xf32, #tpu.memory_space<vmem>>, vector<4x128xf32>
    %c0_1 = arith.constant 0 : index
    %c0_2 = arith.constant 0 : index
    %1 = vector.load %arg2[%c0_1, %c0_2] : memref<1x128xi32, #tpu.memory_space<vmem>>, vector<1x128xi32>
    %c0_3 = arith.constant 0 : index
    %c0_4 = arith.constant 0 : index
    %2 = vector.load %arg3[%c0_3, %c0_4] : memref<4x1xf32, #tpu.memory_space<vmem>>, vector<4x1xf32>
    %3 = tpu.iota {dimensions = array<i32: 0>} : vector<4x128xi32>
    %4 = vector.broadcast %1 : vector<1x128xi32> to vector<4x128xi32>
    %5 = arith.cmpi eq, %3, %4 : vector<4x128xi32>
    %6 = arith.extui %5 : vector<4x128xi1> to vector<4x128xi32>
    %7 = arith.sitofp %6 : vector<4x128xi32> to vector<4x128xf32>
    %8 = arith.mulf %0, %7 : vector<4x128xf32>
    %cst = arith.constant dense<0.000000e+00> : vector<128xf32>
    %9 = vector.multi_reduction <add>, %8, %cst [0] : vector<4x128xf32> to vector<128xf32>
    %10 = vector.shape_cast %9 : vector<128xf32> to vector<1x128xf32>
    %11 = vector.broadcast %2 : vector<4x1xf32> to vector<4x128xf32>
    %12 = arith.mulf %11, %7 : vector<4x128xf32>
    %cst_5 = arith.constant dense<0.000000e+00> : vector<128xf32>
    %13 = vector.multi_reduction <add>, %12, %cst_5 [0] : vector<4x128xf32> to vector<128xf32>
    %14 = vector.shape_cast %13 : vector<128xf32> to vector<1x128xf32>
    %cst_6 = arith.constant dense<0xFF800000> : vector<128xf32>
    %15 = vector.multi_reduction <maximumf>, %0, %cst_6 [0] : vector<4x128xf32> to vector<128xf32>
    %16 = vector.shape_cast %15 : vector<128xf32> to vector<1x128xf32>
    %17 = vector.broadcast %16 : vector<1x128xf32> to vector<4x128xf32>
    %18 = arith.subf %0, %17 : vector<4x128xf32>
    %19 = math.exp %18 : vector<4x128xf32>
    %cst_7 = arith.constant dense<0.000000e+00> : vector<128xf32>
    %20 = vector.multi_reduction <add>, %19, %cst_7 [0] : vector<4x128xf32> to vector<128xf32>
    %21 = vector.shape_cast %20 : vector<128xf32> to vector<1x128xf32>
    %22 = math.log %21 : vector<1x128xf32>
    %23 = arith.subf %10, %16 : vector<1x128xf32>
    %24 = arith.subf %23, %22 : vector<1x128xf32>
    %cst_8 = arith.constant 0.000000e+00 : f32
    %25 = vector.broadcast %cst_8 : f32 to vector<1x128xf32>
    %26 = arith.subf %25, %14 : vector<1x128xf32>
    %cst_9 = arith.constant 1.44269502 : f32
    %27 = vector.broadcast %cst_9 : f32 to vector<1x128xf32>
    %28 = arith.mulf %24, %27 : vector<1x128xf32>
    %29 = arith.mulf %26, %28 : vector<1x128xf32>
    %c128_i32 = arith.constant 128 : i32
    %30 = arith.muli %arg0, %c128_i32 : i32
    %31 = tpu.iota {dimensions = array<i32: 1>} : vector<1x128xi32>
    %32 = vector.broadcast %30 : i32 to vector<1x128xi32>
    %33 = arith.addi %32, %31 : vector<1x128xi32>
    %c256_i32 = arith.constant 256 : i32
    %34 = vector.broadcast %c256_i32 : i32 to vector<1x128xi32>
    %35 = arith.cmpi slt, %33, %34 : vector<1x128xi32>
    %cst_10 = arith.constant 0.000000e+00 : f32
    %36 = vector.broadcast %cst_10 : f32 to vector<1x128xf32>
    %37 = arith.select %35, %29, %36 : vector<1x128xi1>, vector<1x128xf32>
    %cst_11 = arith.constant dense<0.000000e+00> : vector<1xf32>
    %38 = vector.multi_reduction <add>, %37, %cst_11 [1] : vector<1x128xf32> to vector<1xf32>
    %39 = vector.shape_cast %38 : vector<1xf32> to vector<1x1xf32>
    %40 = vector.shape_cast %39 : vector<1x1xf32> to vector<1x1xf32>
    %41 = vector.broadcast %40 : vector<1x1xf32> to vector<1x128xf32>
    %42 = tpu.iota {dimensions = array<i32: 1>} : vector<1x128xi32>
    %c0_i32 = arith.constant 0 : i32
    %43 = vector.broadcast %c0_i32 : i32 to vector<1x128xi32>
    %44 = arith.cmpi eq, %42, %43 : vector<1x128xi32>
    %cst_12 = arith.constant 0.000000e+00 : f32
    %45 = vector.broadcast %cst_12 : f32 to vector<1x128xf32>
    %46 = arith.select %44, %41, %45 : vector<1x128xi1>, vector<1x128xf32>
    %c0_13 = arith.constant 0 : index
    %c0_14 = arith.constant 0 : index
    %47 = vector.load %arg4[%c0_13, %c0_14] : memref<1x128xf32, #tpu.memory_space<vmem>>, vector<1x128xf32>
    tpu.vector_store %arg4[%c0_13, %c0_14], %46 {strides = array<i32>} : memref<1x128xf32, #tpu.memory_space<vmem>>, vector<1x128xf32>,
    return
  }
  func.func @transform_0(%arg0: i32) -> (i32, i32) {
    %c0_i32 = arith.constant 0 : i32
    %c0_i32_0 = arith.constant 0 : i32
    return %c0_i32, %arg0 : i32, i32
  }
  func.func @transform_1(%arg0: i32) -> (i32, i32) {
    %c0_i32 = arith.constant 0 : i32
    %c0_i32_0 = arith.constant 0 : i32
    return %c0_i32, %arg0 : i32, i32
  }
  func.func @transform_2(%arg0: i32) -> (i32, i32) {
    %c0_i32 = arith.constant 0 : i32
    %c0_i32_0 = arith.constant 0 : i32
    %c0_i32_1 = arith.constant 0 : i32
    return %c0_i32, %c0_i32_0 : i32, i32
  }
  func.func @transform_3(%arg0: i32) -> (i32, i32) {
    %c0_i32 = arith.constant 0 : i32
    %c0_i32_0 = arith.constant 0 : i32
    return %c0_i32, %arg0 : i32, i32
  }
}

</mosaic_0001>

<bundles_post_ra>
// kernel: tpu_custom_call.1
= control target key start
LH: loop header
LB: loop body
LE: loop exit
PB: predicated region body
PF: predicated region fallthrough
CT: control target
= control target key end

     0   :  { %8 = vsyncpa [#allocation3], 0  ;;  %s720_s0 = inlined_call_operand.hbm [shape: f32[4,256], index: 0, kind: input, shape index: {}]   ;;  %s721_s1 = inlined_call_operand.vmem [shape: s32[1,256], index: 1, kind: input, shape index: {}]   ;;  %s722_s2 = inlined_call_operand.vmem [shape: f32[4,1], index: 2, kind: input, shape index: {}]   ;;  %s723_s3 = inlined_call_operand.hbm [shape: f32[1,256], index: 3, kind: output, shape index: {}]  }
   0x1   :  { %10 = vsyncpa [#allocation3 + $0x1], 0 }
   0x2   :  { %11 = vsyncpa [#allocation4], 0 }
   0x3   :  { %13 = vsyncpa [#allocation4 + $0x1], 0  ;;  %s545_s12 = smov 0   ;;  %s547_s13 = smov 0  }
   0x4   :  { %s549_s14 = smov 0   ;;  %s551_s15 = smov 0  }
   0x5 LB: > { %s566_s16 = sadd.s32 4294967295, %s519_s15   ;;  %s357_s17 = sadd.s32 4294967294, %s519_s15   ;;  %s519_s15 = sphi %s551_s15, %s738_s15   ;;  %s515_s14 = sphi %s549_s14, %s737_s14   ;;  %s511_s13 = sphi %s547_s13, %s736_s13   ;;  %s507_s12 = sphi %s545_s12, %s735_s12  }
   0x6   : > { %s570_s18 = sadd.s32 1, %s519_s15   ;;  %s26_s19 = sadd.s32 1, %s515_s14 }
   0x7   : > { %s23_s20 = ssub.s32 %s519_s15, %s570_s18  ;;  %p33_p0 = scmp.ne.s32.totalorder %s515_s14, %s511_s13 }
   0x8   : > { %p24_p1 = scmp.eq.s32.totalorder %s23_s20, 0  ;;  %p34_p2 = scmp.eq.s32.totalorder %s519_s15, 0 }
   0x9   : > { %p39_p3 = scmp.ne.s32.totalorder %s511_s13, %s507_s12  ;;  %p40_p4 = scmp.eq.s32.totalorder %s566_s16, 0 }
   0xa   : > { %s582_s21 = scalar_select %p24_p1, %s515_s14, %s26_s19  }
   0xb   : > { %p584_p5 = por %p34_p2, %p33_p0  ;;  %p588_p6 = por %p40_p4, %p39_p3 }
   0xc   : > { %p110_p7 = scmp.eq.s32.totalorder %s566_s16, 1  ;;  %p116_p8 = scmp.eq.s32.totalorder %s357_s17, 1 }
   0xd   : > { %p382_p10 = scmp.lt.s32.totalorder %s519_s15, 2  ;;  %s139_s26 = sand.u32 1, %s515_s14  }
   0xe   : > { %p595_p11 = por %p110_p7, %p33_p0  ;;  %p599_p12 = por %p116_p8, %p39_p3 }
   0xf   : > { %s361_s27 = sshll.u32 %s519_s15, 6  ;;  %s360_s28 = sshll.u32 %s139_s26, 2 }
  0x10   : > { %s727_s24 = scalar_select %p595_p11, 1, 0 }
  0x11   : > { %s728_s25 = scalar_select %p599_p12, 1, 0 }
  0x12   : > { %s608_s4 = scalar_lea.hbm %s720_s0, %s361_s27  ;;  %s143_s5 = scalar_lea.vmem [#allocation2], %s360_s28 }
  0x13   : > { %s150_s6 = sshll.u32 %s143_s5, 4  ;;  %p612_p13 = pnand %p382_p10, %p584_p5  ;;  %s616_s6 = int_to_ptr.vmem [resolvable:$true] %s150_s6 }
  0x14   : > { %s140_s8 = scalar_lea.sflag [#allocation3], %s139_s26  ;;  %s423_s9 = scalar_lea.hbm %s608_s4, 64 }
  0x15   : > { %p424_p2 = scmp.ne.s32.totalorder %s608_s4, %s423_s9  ;;  %p425_p3 = pneg %p612_p13 }
  0x16   : > { %s428_s17 = scalar_lea.hbm %s720_s0, 128  ;;  %p429_p5 = scmp.lt.u32.totalorder %s608_s4, %s720_s0 }
  0x17   : > { %p426_p4 = pnand %p425_p3, %p424_p2  ;;  %p430_p8 = scmp.lt.u32.totalorder %s428_s17, %s423_s9 }
  0x18   : > { %p432_p9 = scmp.lt.u32.totalorder %s423_s9, %s608_s4 }
  0x19   : > { %p427_p7 = pneg %p426_p4  ;;  %p431_p10 = por %p430_p8, %p429_p5 }
  0x1b   : > { %p433_p0 = por %p432_p9, %p431_p10 }
  0x1d   : > { %p434_p1 = pnand %p433_p0, %p427_p7 }
  0x1f   : > { %437 = shalt.err (!%p434_p1)
}
  0x20   : > { %s438_s22 = scalar_lea.vmem %s616_s6, 64  ;;  %s521_s26 = smov [#allocation2]  }
  0x21   : > { %p439_p2 = scmp.ne.s32.totalorder %s616_s6, %s438_s22  ;;  %s443_s27 = sshll.u32 %s521_s26, 4  ;;  %s444_s27 = int_to_ptr.vmem [resolvable:$false] %s443_s27 }
  0x22   : > { %s445_s28 = scalar_lea.vmem %s444_s27, 128  ;;  %p446_p11 = scmp.lt.s32.totalorder %s616_s6, %s444_s27 }
  0x23   : > { %p441_p4 = pnand %p439_p2, %p425_p3  ;;  %p447_p5 = scmp.lt.s32.totalorder %s445_s28, %s438_s22 }
  0x25   : > { %p442_p12 = pneg %p441_p4  ;;  %p448_p8 = por %p447_p5, %p446_p11 }
  0x27   : > { %p449_p9 = pnand %p448_p8, %p442_p12 }
  0x29   : > { %452 = shalt.err (!%p449_p9)
}
  0x2a   : > { %377 = dma.hbm_to_vmem [thread:$0]  (!%p612_p13), %s608_s4, 64, %s616_s6, %s140_s8  }
  0x2b   : > { %p730_p0 = scmp.lt.s32.totalorder %s519_s15, 3  ;;  %p731_p1 = scmp.ge.s32.totalorder %s519_s15, 1 }
  0x2d   : > { %p162_p3 = pnand %p731_p1, %p730_p0 }
  0x2e   : > { %s650_s29 = sand.u32 (!%p162_p3), 1, %s511_s13  }
  0x2f   : > { %165 = sbr.rel (%p162_p3) target bundleno = 362 (0x16a), region = 32  ;;  %s363_s30 = sshll.u32 (!%p162_p3), %s650_s29, 2 }
  0x30   : > { %s168_s5 = scalar_lea.sflag (!%p162_p3), [#allocation3], %s650_s29  ;;  %s171_s9 = scalar_lea.vmem (!%p162_p3), [#allocation2], %s363_s30 }
  0x36   : > { %498 = dma.done.wait (%p588_p6), %s168_s5, 64  }
  0x37   : > { %500 = vsyncadd (%p588_p6), %s168_s5, 4294967232  ;;  %v522_v0 = vmov 0   ;;  %v201_v1 = vld [vmem:[%s722_s2] sm:$0xf]  ;;  %vm212_vm0 = vcmask 1043456   ;;  %p196_p6 = scmp.lt.s32.totalorder %s566_s16, 1  ;;  %v202_v12 = vlaneseq }
  0x38   : > { %418 = vset.pattern.permute.xlu0 %v522_v0  ;;  %v199_v2 = vld [vmem:[%s171_s9] sm:$0xf]  ;;  %v523_v18 = vmov 0.0   ;;  %s366_s11 = sshll.u32 %s566_s16, 7  ;;  %s367_s17 = sshll.u32 %s566_s16, 4 }
  0x39   : > { %222 = vperm.xlu0 %418, %v201_v1   ;;  %v233_v3 = vsel %vm212_vm0, %v199_v2, -inf  ;;  %s197_s23 = scalar_select %p196_p6, %s566_s16, 1  ;;  %v203_v14 = vshrl.u32 %v202_v12, 7  ;;  %v259_v42 = vand.u32 127, %v202_v12  ;;  %v260_v45 = vstv %s366_s11 }
  0x3a   : > { %v234_v4 = vrot.slane %v233_v3, 4  ;;  %s195_s19 = scalar_lea.vmem [#allocation5], %s650_s29  ;;  %s676_s27 = scalar_lea.hbm %s723_s3, %s367_s17 }
  0x3b   : > { %s198_s10 = scalar_lea.vmem %s721_s1, %s197_s23  ;;  %v261_v47 = vadd.s32 %v260_v45, %v259_v42  ;;  %s282_s20 = sshll.u32 %s195_s19, 4  ;;  %vm266_vm3 = vcmp.eq.s32.totalorder %v259_v42, 0  ;;  %s678_s20 = int_to_ptr.vmem [resolvable:$true] %s282_s20 }
  0x3c   : > { %v235_v5 = vmax.f32 %v233_v3, %v234_v4  ;;  %v364_v15 = vld [vmem:[%s198_s10] ss:$0 sm:$0xff]  ;;  %s270_s28 = scalar_lea.sflag [#allocation4], %s650_s29  ;;  %s453_s30 = scalar_lea.vmem %s678_s20, 16 }
  0x3d   : > { %vm208_vm1 = vcmp.eq.s32.totalorder %v203_v14, %v364_v15  ;;  %vm262_vm2 = vcmp.lt.s32.totalorder %v261_v47, 256  ;;  %p454_p11 = scmp.ne.s32.totalorder %s678_s20, %s453_s30  ;;  %p732_p12 = scmp.ne.s32.totalorder %s727_s24, 0 }
  0x3e   : > { %v236_v6 = vrot.slane %v235_v5, 2  ;;  %v365_v19 = vsel %vm208_vm1, 1.0, %v523_v18  ;;  %s524_s16 = smov [#allocation5]  }
  0x3f   : > { %v211_v21 = vmul.f32 %v365_v19, %v199_v2  ;;  %p455_p13 = pnand %p454_p11, %p732_p12  ;;  %s457_s5 = sshll.u32 %s524_s16, 4  ;;  %s458_s5 = int_to_ptr.vmem [resolvable:$false] %s457_s5 }
  0x40   : > { %v237_v7 = vmax.f32 %v235_v5, %v236_v6  ;;  %s459_s9 = scalar_lea.vmem %s458_s5, 32  ;;  %p460_p10 = scmp.lt.s32.totalorder %s678_s20, %s458_s5 }
  0x41   : > { %v213_v23 = vsel %vm212_vm0, %v211_v21, 0.0  ;;  %p456_p7 = pneg %p455_p13  ;;  %p461_p2 = scmp.lt.s32.totalorder %s459_s9, %s453_s30 }
  0x42   : > { %v238_v8 = vrot.slane %v237_v7, 1  ;;  %v214_v25 = vrot.slane %v213_v23, 4 }
  0x43   : > { %p462_p4 = por %p461_p2, %p460_p10 }
  0x44   : > { %v239_v9 = vmax.f32 %v237_v7, %v238_v8  ;;  %v215_v27 = vadd.f32 %v214_v25, %v213_v23 }
  0x45   : > { %p463_p5 = pnand %p462_p4, %p456_p7 }
  0x46   : > { %v240_v10 = vsub.f32 %v199_v2, %v239_v9  ;;  %v216_v29 = vrot.slane %v215_v27, 2 }
  0x48   : > { %v241_v11 = vmul.f32 1.442695, %v240_v10  ;;  %v217_v30 = vadd.f32 %v216_v29, %v215_v27 }
  0x4a   : > { %419 = vpow2.f32 %v241_v11  ;;  %v218_v31 = vrot.slane %v217_v30, 1 }
  0x4c   : > { %v219_v34 = vadd.f32 %v218_v31, %v217_v30 }
  0x4e   : > { %v252_v40 = vsub.f32 %v219_v34, %v239_v9 }
  0x54   : > { %v420_v13 = vpop.eup %419 }
  0x55   : > { %v243_v16 = vsel %vm212_vm0, %v420_v13, 0.0 }
  0x56   : > { %v244_v17 = vrot.slane %v243_v16, 4 }
  0x58   : > { %v245_v20 = vadd.f32 %v244_v17, %v243_v16 }
  0x5a   : > { %v246_v22 = vrot.slane %v245_v20, 2 }
  0x5c   : > { %v247_v24 = vadd.f32 %v246_v22, %v245_v20 }
  0x5e   : > { %v248_v26 = vrot.slane %v247_v24, 1 }
  0x60   : > { %v249_v28 = vadd.f32 %v248_v26, %v247_v24 }
  0x62   : > { %421 = vlog2.f32 %v249_v28 }
  0x6c   : > { %v422_v35 = vpop.eup %421 }
  0x6d   : > { %v251_v39 = vmul.f32 0.6931472, %v422_v35 }
  0x6f   : > { %v253_v44 = vsub.f32 %v252_v40, %v251_v39 }
  0x71   : > { %v255_v49 = vmul.f32 1.442695, %v253_v44 }
  0xb8   : > { %v223_v32 = vpop.permute.xlu0 %222 }
  0xb9   : > { %v225_v33 = vmul.f32 %v365_v19, %v223_v32 }
  0xbb   : > { %v226_v36 = vsel %vm212_vm0, %v225_v33, 0.0 }
  0xbc   : > { %v227_v37 = vrot.slane %v226_v36, 4 }
  0xbe   : > { %v228_v38 = vadd.f32 %v227_v37, %v226_v36 }
  0xc0   : > { %v229_v41 = vrot.slane %v228_v38, 2 }
  0xc2   : > { %v230_v43 = vadd.f32 %v229_v41, %v228_v38 }
  0xc4   : > { %v231_v46 = vrot.slane %v230_v43, 1 }
  0xc6   : > { %v232_v48 = vadd.f32 %v231_v46, %v230_v43 }
  0xc8   : > { %v254_v50 = vsub.f32 0.0, %v232_v48 }
  0xca   : > { %v256_v51 = vmul.f32 %v255_v49, %v254_v50 }
  0xcc   : > { %v263_v52 = vsel %vm262_vm2, %v256_v51, 0.0 }
  0xcd   : > { %264 = vadd.xlane.f32.xlu0 %v263_v52 }
 0x15a   : > { %v265_v53 = vpop.xlane.xlu0 %264 }
 0x15b   : > { %v267_v54 = vsel %vm266_vm3, %v265_v53, 0.0 }
 0x15c   : > { %268 = vst [vmem:[%s195_s19] sm:$0x1] %v267_v54 }
 0x15d   : > { %466 = shalt.err (!%p463_p5)
}
 0x15e   : > { %s467_s29 = scalar_lea.hbm %s676_s27, 16  ;;  %s471_s23 = scalar_lea.hbm %s723_s3, 32 }
 0x15f   : > { %p468_p8 = scmp.ne.s32.totalorder %s676_s27, %s467_s29  ;;  %p472_p1 = scmp.lt.u32.totalorder %s676_s27, %s723_s3 }
 0x160   : > { %p473_p3 = scmp.lt.u32.totalorder %s471_s23, %s467_s29  ;;  %p475_p11 = scmp.lt.u32.totalorder %s467_s29, %s676_s27 }
 0x161   : > { %p469_p9 = pnand %p468_p8, %p732_p12 }
 0x162   : > { %p474_p6 = por %p473_p3, %p472_p1 }
 0x163   : > { %p470_p0 = pneg %p469_p9 }
 0x164   : > { %p476_p13 = por %p475_p11, %p474_p6 }
 0x166   : > { %p477_p7 = pnand %p476_p13, %p470_p0 }
 0x168   : > { %480 = shalt.err (!%p477_p7)
}
 0x169   : > { %372 = dma.vmem_to_hbm [thread:$0]  (%p732_p12), %s678_s20, 16, %s676_s27, %s270_s28  }
 0x16a PF: > { %s294_s10 = sand.u32 1, %s507_s12   ;;  %p733_p10 = scmp.ne.s32.totalorder %s728_s25, 0 }
 0x16b   : > { %p734_p2 = scmp.ge.s32.totalorder %s519_s15, 2  ;;  %s295_s11 = scalar_lea.sflag [#allocation4], %s294_s10 }
 0x16d   : > { %p379_p4 = pnand %p734_p2, %p733_p10 }
 0x16f   : > { %502 = dma.done.wait (!%p379_p4), %s295_s11, 16  }
 0x170   : > { %504 = vsyncadd (!%p379_p4), %s295_s11, 4294967280  ;;  %p16_p5 = scmp.ge.s32.totalorder %s570_s18, 4   ;;  %s735_s12 = smov %s511_s13 }
 0x171   : > { %s736_s13 = smov %s515_s14  ;;  %s737_s14 = smov %s582_s21 }
 0x172   : > { %s738_s15 = smov %s570_s18  ;;  %18 = sbr.rel (!%p16_p5) target bundleno = 5 (0x5), region = 80 }
 0x179   :  { %299 = vsyncpa [#allocation3], 1 }
 0x17a   :  { %301 = vsyncpa [#allocation3 + $0x1], 1 }
 0x17b   :  { %302 = vsyncpa [#allocation4], 1 }
 0x17c   :  { %304 = vsyncpa [#allocation4 + $0x1], 1 }

</bundles_post_ra>
